<compile_context>
chip_gen: v7x
topology: tpu7x:2x2x1
jax: 0.10.0
libtpu: 0.0.40
codegen_flags: <defaults>
</compile_context>

<pallas_src>
import math

import jax
import jax.numpy as jnp
from jax.experimental import pallas as pl
from jax.experimental.pallas import tpu as pltpu

_LANE = 128
_SUBLANE = 8


def _round_up(x, m):
    return (x + m - 1) // m * m


# ----------------------------------------------------------------------------
# Kernel body: per grid step (b, h-tile) DMA the halo rows of one batch
# element into VMEM (double buffered, prefetching the next tile) and run kH
# block-banded MXU matmuls.
# ----------------------------------------------------------------------------
def _make_conv_kernel(TH, kH, halo_rows, WC_pad):
    def kernel(xp_hbm, w_ref, o_ref, xbuf, sem):
        b = pl.program_id(0)
        h = pl.program_id(1)
        n_h = pl.num_programs(1)

        def halo_copy(row_start, slot):
            start = pl.multiple_of(row_start, _SUBLANE)   # TH is a multiple of 8
            return pltpu.make_async_copy(
                xp_hbm.at[b, pl.ds(start, halo_rows)],    # (halo_rows, WpC_pad) in HBM
                xbuf.at[slot],
                sem.at[slot])

        # First tile of this batch element: nobody prefetched it; fetch now.
        @pl.when(h == 0)
        def _():
            halo_copy(h * TH, 0).start()

        # Prefetch the next H tile (same batch element) into the other slot so
        # its DMA overlaps with this tile's matmuls.
        @pl.when(h + 1 < n_h)
        def _():
            halo_copy((h + 1) * TH, (h + 1) % 2).start()

        slot = h % 2
        halo_copy(h * TH, slot).wait()

        acc = jnp.zeros((TH, WC_pad), jnp.float32)
        for i in range(kH):                               # static unroll over kernel rows
            lhs = xbuf[slot, pl.ds(i, TH), :]             # (TH, WpC_pad) sublane-offset load
            acc = acc + jnp.dot(lhs, w_ref[i],
                                preferred_element_type=jnp.float32)
        o_ref[0] = acc.astype(o_ref.dtype)

    return kernel


def _pick_tile_h(B, H, kH, WpC_pad, WC_pad, itemsize, budget_bytes=24 << 20):
    """H tile: multiple of 8, fits the per-step VMEM budget, and small enough
    that small problems still get a few grid steps (megacore + prefetch)."""
    def var_bytes(th):
        halo = _round_up(th + kH - 1, _SUBLANE)
        return (2 * halo * WpC_pad * itemsize      # double-buffered halo input
                + 2 * th * WC_pad * itemsize       # double-buffered output block
                + th * WpC_pad * 4                 # f32 LHS working tile
                + 2 * th * WC_pad * 4)             # f32 accumulator working set
    th = _round_up(min(max(H, 1), 256), _SUBLANE)
    while th > _SUBLANE and var_bytes(th) > budget_bytes:
        th -= _SUBLANE
    while th > _SUBLANE and B * ((H + th - 1) // th) < 4:
        th -= _SUBLANE
    return th


# ----------------------------------------------------------------------------
# Depthwise "same" convolution: x [B,C,H,W], kernel [C,kH,kW] -> [B,C,H,W].
# ----------------------------------------------------------------------------
@jax.jit
def convolution_2d(x, kernel):
    B, C, H, W = x.shape
    Ck, kH, kW = kernel.shape
    assert C == Ck
    # PyTorch's F.pad argument-order quirk swaps the kH/kW pad amounts; for the
    # square kernels DiffusionR2 uses this is a no-op, so pad with floor on the
    # leading side like the reference.
    p_top = (kH - 1) // 2
    p_lft = (kW - 1) // 2
    Wp = W + kW - 1
    WC, WpC = W * C, Wp * C
    WC_pad = _round_up(WC, _LANE)       # lane-dense output -> unmasked vst
    WpC_pad = _round_up(WpC, _LANE)

    itemsize = jnp.dtype(x.dtype).itemsize
    TH = _pick_tile_h(B, H, kH, WpC_pad, WC_pad, itemsize)
    nH = (H + TH - 1) // TH
    H_pad = nH * TH
    halo_rows = _round_up(TH + kH - 1, _SUBLANE)   # 8-aligned halo DMAs
    Hp_pad = H_pad - TH + halo_rows                # every halo DMA stays in bounds

    # Layout plumbing (fused by XLA into the layout-change copy): NCHW -> NHWC,
    # zero-pad H/W, fuse (W, C) into the lane axis, pad lanes to 128.
    x_nhwc = jnp.transpose(x, (0, 2, 3, 1))                              # (B, H, W, C)
    xp = jnp.pad(
        x_nhwc,
        ((0, 0), (p_top, Hp_pad - H - p_top), (p_lft, Wp - W - p_lft), (0, 0)))
    xp = xp.reshape(B, Hp_pad, WpC)
    if WpC_pad > WpC:
        xp = jnp.pad(xp, ((0, 0), (0, 0), (0, WpC_pad - WpC)))

    # Block-banded weights: Wmat[i, (w+j)*C + c, w*C + c] = kernel[c, i, j].
    # One (WpC_pad, WC_pad) matrix per kernel row; the matmul absorbs every
    # lane (W) shift and the per-channel tap weights.  Padded lanes stay zero.
    vals = jnp.transpose(kernel, (1, 2, 0)).astype(jnp.float32)          # (kH, kW, C)
    w_idx = jnp.arange(W)[:, None, None]
    j_idx = jnp.arange(kW)[None, :, None]
    c_idx = jnp.arange(C)[None, None, :]
    row_idx = jnp.broadcast_to((w_idx + j_idx) * C + c_idx, (W, kW, C))
    col_idx = jnp.broadcast_to(w_idx * C + c_idx, (W, kW, C))
    wmat = jnp.zeros((kH, WpC_pad, WC_pad), jnp.float32)
    wmat = wmat.at[
        jnp.arange(kH)[:, None, None, None],
        jnp.broadcast_to(row_idx, (kH, W, kW, C)),
        jnp.broadcast_to(col_idx, (kH, W, kW, C)),
    ].set(jnp.broadcast_to(vals[:, None, :, :], (kH, W, kW, C)))

    # Honest VMEM budget: halo double buffer + (double-buffered) weight block +
    # double-buffered output block + f32 working set, plus headroom; capped so
    # it is also valid on v7x's 64 MiB VMEM.
    step_bytes = (2 * halo_rows * WpC_pad * itemsize
                  + 2 * TH * WC_pad * itemsize
                  + TH * WpC_pad * 4
                  + 2 * TH * WC_pad * 4)
    weight_bytes = 2 * kH * WpC_pad * WC_pad * 4
    vmem_limit = int(min(48 << 20,
                         max(step_bytes + weight_bytes + (2 << 20), 16 << 20)))

    out_fused = pl.pallas_call(
        _make_conv_kernel(TH, kH, halo_rows, WC_pad),
        out_shape=jax.ShapeDtypeStruct((B, H_pad, WC_pad), x.dtype),
        grid_spec=pltpu.PrefetchScalarGridSpec(
            num_scalar_prefetch=0,
            grid=(B, nH),
            in_specs=[
                pl.BlockSpec(memory_space=pl.ANY),            # x stays in HBM; manual halo DMA
                pl.BlockSpec((kH, WpC_pad, WC_pad), lambda b, h: (0, 0, 0)),
            ],
            out_specs=pl.BlockSpec((1, TH, WC_pad), lambda b, h: (b, h, 0)),
            scratch_shapes=[
                pltpu.VMEM((2, halo_rows, WpC_pad), x.dtype),  # double-buffered halo
                pltpu.SemaphoreType.DMA((2,)),
            ],
        ),
        compiler_params=pltpu.CompilerParams(
            dimension_semantics=("parallel", "arbitrary"),
            vmem_limit_bytes=vmem_limit),
    )(xp, wmat)

    # Undo the layout plumbing: (B, H_pad, WC_pad) -> (B, C, H, W).
    out = out_fused[:, :H, :WC].reshape(B, H, W, C)
    return jnp.transpose(out, (0, 3, 1, 2))


# ----------------------------------------------------------------------------
# Kernel-weight generation (plain-JAX glue, O(C * k * k) elements).
# ----------------------------------------------------------------------------
def get_y(size):
    coords = jnp.stack(
        jnp.meshgrid(jnp.arange(size), jnp.arange(size), indexing="ij"),
        axis=-1).astype(jnp.float32)                    # y[i, j] = [i, j]
    origin = jnp.array([size // 2, size // 2], jnp.float32)
    return coords - origin                              # [k, k, 2]


def get_norm_sq(y, D):
    # D: [C, 2, 2], y: [k, k, 2];  v[c,i,j,:] = D[c] @ y[i,j]
    v = jnp.einsum("cab,ijb->cija", D, y)
    return jnp.sum(v * v, axis=-1)                      # ||D y||^2, shape [C, k, k]


def get_scale(norm_sq, alpha, s):
    t = math.pow(s, 1.0 / alpha)
    c1 = 1.0 / math.gamma(1.0 + 1.0 / alpha)
    c2 = math.sqrt(2.0 * c1)
    val = (3.0 * (-2.0 + (1.0 + 2.0 * alpha) * c2)) / (
        (1.0 + 2.0 * alpha) * (-2.0 * c1 + 3.0 * c2))
    tg = c1 * t                                         # Gauss scale
    gauss = (1.0 / (4.0 * math.pi * tg)) * jnp.exp(-norm_sq / (4.0 * tg))
    tp = c2 * math.sqrt(t)                              # Poisson scale
    poi = (math.gamma(1.5) / math.pow(math.pi, 1.5)) * tp / jnp.power(
        tp * tp + norm_sq, 1.5)
    return val * gauss + (1.0 - val) * poi


def diffusion_r2_forward(x, diff_metric, kernel_size, alpha=0.65, t=1.0):
    y = get_y(kernel_size)
    kernel = get_scale(get_norm_sq(y, diff_metric), alpha, t)   # [C, k, k]
    return convolution_2d(x, kernel)


# ----------------------------------------------------------------------------
# Plain-JAX reference (correctness check only).
# ----------------------------------------------------------------------------
def _ref_conv(x, kernel):
    B, C, H, W = x.shape
    _, kH, kW = kernel.shape
    pt = (kH - 1) // 2
    pb = kH - 1 - pt
    plft = (kW - 1) // 2
    prgt = kW - 1 - plft
    xp = jnp.pad(x, ((0, 0), (0, 0), (pt, pb), (plft, prgt)))
    out = jnp.zeros_like(x)
    for i in range(kH):
        for j in range(kW):
            out = out + kernel[None, :, i, j, None, None] * xp[:, :, i:i + H, j:j + W]
    return out


if __name__ == "__main__":
    B, C, H, W = 2, 4, 16, 16
    kernel_size = 5
    alpha = 0.65

    key = jax.random.PRNGKey(0)
    kx, km = jax.random.split(key)
    x = jax.random.normal(kx, (B, C, H, W), jnp.float32)

    # kaiming_uniform_(a=sqrt(2)) on [C, 2, 2]: fan_in = 4, gain = sqrt(2/3),
    # bound = gain * sqrt(3 / fan_in)
    bound = math.sqrt(2.0 / 3.0) * math.sqrt(3.0 / 4.0)
    diff_metric = jax.random.uniform(km, (C, 2, 2), jnp.float32, -bound, bound)

    out = diffusion_r2_forward(x, diff_metric, kernel_size, alpha=alpha, t=1.0)
    out = jax.block_until_ready(out)

    kern = get_scale(get_norm_sq(get_y(kernel_size), diff_metric), alpha, 1.0)
    ref = _ref_conv(x, kern)
    assert out.shape == (B, C, H, W)
    err = float(jnp.max(jnp.abs(out - ref)))
    # Tolerance leaves headroom for MXU f32 pass behavior while still catching
    # any structural (tap/offset) error, which would be O(0.01+).
    assert jnp.allclose(out, ref, atol=1e-3, rtol=1e-3), err

    print("KERNEL_OK")
</pallas_src>

<mosaic_0001>
module attributes {stable_mosaic.version = 11 : i64} {
  func.func @kernel(%arg0: i32, %arg1: i32, %arg2: memref<2x24x128xf32, #tpu.memory_space<any>>, %arg3: memref<5x128x128xf32, #tpu.memory_space<vmem>>, %arg4: memref<1x8x128xf32, #tpu.memory_space<vmem>>, %arg5: memref<2x16x128xf32, #tpu.memory_space<vmem>>, %arg6: memref<2x!tpu.dma_semaphore, #tpu.memory_space<semaphore_mem>>) attributes {dimension_semantics = [#tpu.dimension_semantics<parallel>, #tpu.dimension_semantics<arbitrary>], iteration_bounds = array<i64: 2, 2>, scalar_prefetch = 0 : i64, scratch_operands = 2 : i64, tpu.core_type = #tpu.core_type<tc>, window_params = [{}, {pipeline_mode = #tpu.pipeline_mode<synchronous>, transform_indices = @transform_1, window_bounds = array<i64: 5, 128, 128>}, {transform_indices = @transform_2, window_bounds = array<i64: 1, 8, 128>}]} {
    %c0_i32 = arith.constant 0 : i32
    %0 = arith.cmpi eq, %arg1, %c0_i32 : i32
    %1 = arith.extui %0 : i1 to i32
    %c0_i32_0 = arith.constant 0 : i32
    %2 = arith.cmpi ne, %1, %c0_i32_0 : i32
    scf.if %2 {
      %c8_i32_39 = arith.constant 8 : i32
      %64 = arith.muli %arg1, %c8_i32_39 : i32
      %65 = tpu.assume_multiple %64, 8 : i32
      %c0_i32_40 = arith.constant 0 : i32
      %c0_i32_41 = arith.constant 0 : i32
      %c0_i32_42 = arith.constant 0 : i32
      %66 = tpu.memref_slice %arg2[%arg0, %65, %c0_i32_42] : memref<2x24x128xf32, #tpu.memory_space<any>> -> memref<1x16x128xf32, #tpu.memory_space<any>>
      %67 = tpu.memref_squeeze %66 : memref<1x16x128xf32, #tpu.memory_space<any>> -> memref<16x128xf32, #tpu.memory_space<any>>
      %c0_i32_43 = arith.constant 0 : i32
      %c0_i32_44 = arith.constant 0 : i32
      %68 = tpu.memref_slice %arg5[%c0_i32_40, %c0_i32_43, %c0_i32_44] : memref<2x16x128xf32, #tpu.memory_space<vmem>> -> memref<1x16x128xf32, #tpu.memory_space<vmem>>
      %69 = tpu.memref_squeeze %68 : memref<1x16x128xf32, #tpu.memory_space<vmem>> -> memref<16x128xf32, #tpu.memory_space<vmem>>
      %70 = tpu.memref_slice %arg6[%c0_i32_41] : memref<2x!tpu.dma_semaphore, #tpu.memory_space<semaphore_mem>> -> memref<1x!tpu.dma_semaphore, #tpu.memory_space<semaphore_mem>>
      %71 = tpu.memref_squeeze %70 : memref<1x!tpu.dma_semaphore, #tpu.memory_space<semaphore_mem>> -> memref<!tpu.dma_semaphore, #tpu.memory_space<semaphore_mem>>
      tpu.enqueue_dma source(%67 : memref<16x128xf32, #tpu.memory_space<any>>) target(%69 : memref<16x128xf32, #tpu.memory_space<vmem>>) target_semaphore(%71 : memref<!tpu.dma_semaphore, #tpu.memory_space<semaphore_mem>>)
    } else {
    }
    %c1_i32 = arith.constant 1 : i32
    %3 = arith.addi %arg1, %c1_i32 : i32
    %c2_i32 = arith.constant 2 : i32
    %4 = arith.cmpi slt, %3, %c2_i32 : i32
    %5 = arith.extui %4 : i1 to i32
    %c0_i32_1 = arith.constant 0 : i32
    %6 = arith.cmpi ne, %5, %c0_i32_1 : i32
    scf.if %6 {
      %c1_i32_39 = arith.constant 1 : i32
      %64 = arith.addi %arg1, %c1_i32_39 : i32
      %c8_i32_40 = arith.constant 8 : i32
      %65 = arith.muli %64, %c8_i32_40 : i32
      %c1_i32_41 = arith.constant 1 : i32
      %66 = arith.addi %arg1, %c1_i32_41 : i32
      %c2_i32_42 = arith.constant 2 : i32
      %c0_i32_43 = arith.constant 0 : i32
      %67 = arith.cmpi eq, %c2_i32_42, %c0_i32_43 : i32
      %c1_i32_44 = arith.constant 1 : i32
      %68 = arith.select %67, %c1_i32_44, %c2_i32_42 : i32
      %69 = arith.remsi %66, %68 : i32
      %c0_i32_45 = arith.constant 0 : i32
      %70 = arith.cmpi ne, %69, %c0_i32_45 : i32
      %c0_i32_46 = arith.constant 0 : i32
      %71 = arith.cmpi slt, %69, %c0_i32_46 : i32
      %c0_i32_47 = arith.constant 0 : i32
      %72 = arith.cmpi slt, %68, %c0_i32_47 : i32
      %73 = arith.xori %71, %72 : i1
      %74 = arith.andi %73, %70 : i1
      %75 = arith.addi %69, %68 : i32
      %76 = arith.select %74, %75, %69 : i32
      %77 = tpu.assume_multiple %65, 8 : i32
      %c0_i32_48 = arith.constant 0 : i32
      %78 = tpu.memref_slice %arg2[%arg0, %77, %c0_i32_48] : memref<2x24x128xf32, #tpu.memory_space<any>> -> memref<1x16x128xf32, #tpu.memory_space<any>>
      %79 = tpu.memref_squeeze %78 : memref<1x16x128xf32, #tpu.memory_space<any>> -> memref<16x128xf32, #tpu.memory_space<any>>
      %c0_i32_49 = arith.constant 0 : i32
      %c0_i32_50 = arith.constant 0 : i32
      %80 = tpu.memref_slice %arg5[%76, %c0_i32_49, %c0_i32_50] : memref<2x16x128xf32, #tpu.memory_space<vmem>> -> memref<1x16x128xf32, #tpu.memory_space<vmem>>
      %81 = tpu.memref_squeeze %80 : memref<1x16x128xf32, #tpu.memory_space<vmem>> -> memref<16x128xf32, #tpu.memory_space<vmem>>
      %82 = tpu.memref_slice %arg6[%76] : memref<2x!tpu.dma_semaphore, #tpu.memory_space<semaphore_mem>> -> memref<1x!tpu.dma_semaphore, #tpu.memory_space<semaphore_mem>>
      %83 = tpu.memref_squeeze %82 : memref<1x!tpu.dma_semaphore, #tpu.memory_space<semaphore_mem>> -> memref<!tpu.dma_semaphore, #tpu.memory_space<semaphore_mem>>
      tpu.enqueue_dma source(%79 : memref<16x128xf32, #tpu.memory_space<any>>) target(%81 : memref<16x128xf32, #tpu.memory_space<vmem>>) target_semaphore(%83 : memref<!tpu.dma_semaphore, #tpu.memory_space<semaphore_mem>>)
    } else {
    }
    %c2_i32_2 = arith.constant 2 : i32
    %c0_i32_3 = arith.constant 0 : i32
    %7 = arith.cmpi eq, %c2_i32_2, %c0_i32_3 : i32
    %c1_i32_4 = arith.constant 1 : i32
    %8 = arith.select %7, %c1_i32_4, %c2_i32_2 : i32
    %9 = arith.remsi %arg1, %8 : i32
    %c0_i32_5 = arith.constant 0 : i32
    %10 = arith.cmpi ne, %9, %c0_i32_5 : i32
    %c0_i32_6 = arith.constant 0 : i32
    %11 = arith.cmpi slt, %9, %c0_i32_6 : i32
    %c0_i32_7 = arith.constant 0 : i32
    %12 = arith.cmpi slt, %8, %c0_i32_7 : i32
    %13 = arith.xori %11, %12 : i1
    %14 = arith.andi %13, %10 : i1
    %15 = arith.addi %9, %8 : i32
    %16 = arith.select %14, %15, %9 : i32
    %c8_i32 = arith.constant 8 : i32
    %17 = arith.muli %arg1, %c8_i32 : i32
    %18 = tpu.assume_multiple %17, 8 : i32
    %c0_i32_8 = arith.constant 0 : i32
    %19 = tpu.memref_slice %arg2[%arg0, %18, %c0_i32_8] : memref<2x24x128xf32, #tpu.memory_space<any>> -> memref<1x16x128xf32, #tpu.memory_space<any>>
    %20 = tpu.memref_squeeze %19 : memref<1x16x128xf32, #tpu.memory_space<any>> -> memref<16x128xf32, #tpu.memory_space<any>>
    %c0_i32_9 = arith.constant 0 : i32
    %c0_i32_10 = arith.constant 0 : i32
    %21 = tpu.memref_slice %arg5[%16, %c0_i32_9, %c0_i32_10] : memref<2x16x128xf32, #tpu.memory_space<vmem>> -> memref<1x16x128xf32, #tpu.memory_space<vmem>>
    %22 = tpu.memref_squeeze %21 : memref<1x16x128xf32, #tpu.memory_space<vmem>> -> memref<16x128xf32, #tpu.memory_space<vmem>>
    %23 = tpu.memref_slice %arg6[%16] : memref<2x!tpu.dma_semaphore, #tpu.memory_space<semaphore_mem>> -> memref<1x!tpu.dma_semaphore, #tpu.memory_space<semaphore_mem>>
    %24 = tpu.memref_squeeze %23 : memref<1x!tpu.dma_semaphore, #tpu.memory_space<semaphore_mem>> -> memref<!tpu.dma_semaphore, #tpu.memory_space<semaphore_mem>>
    tpu.wait_dma2 semaphore(%24 : memref<!tpu.dma_semaphore, #tpu.memory_space<semaphore_mem>>) src(%20 : memref<16x128xf32, #tpu.memory_space<any>>) dst(%22 : memref<16x128xf32, #tpu.memory_space<vmem>>)
    %cst = arith.constant 0.000000e+00 : f32
    %25 = vector.broadcast %cst : f32 to vector<8x128xf32>
    %26 = arith.index_cast %16 : i32 to index
    %c0 = arith.constant 0 : index
    %c0_11 = arith.constant 0 : index
    %27 = vector.load %arg5[%26, %c0, %c0_11] : memref<2x16x128xf32, #tpu.memory_space<vmem>>, vector<1x8x128xf32>
    %28 = vector.shape_cast %27 : vector<1x8x128xf32> to vector<8x128xf32>
    %c0_12 = arith.constant 0 : index
    %c0_13 = arith.constant 0 : index
    %c0_14 = arith.constant 0 : index
    %29 = vector.load %arg3[%c0_12, %c0_13, %c0_14] : memref<5x128x128xf32, #tpu.memory_space<vmem>>, vector<1x128x128xf32>
    %30 = vector.shape_cast %29 : vector<1x128x128xf32> to vector<128x128xf32>
    %cst_15 = arith.constant dense<0.000000e+00> : vector<8x128xf32>
    %31 = tpu.matmul %28, %30, %cst_15 {dimension_numbers = #tpu.dot_dimension_numbers<[1], [0], [0], [1], [0, 0, 1, 1], [], []>} : vector<8x128xf32>, vector<128x128xf32>, vector<8x128xf32> -> vector<8x128xf32>
    %32 = arith.addf %25, %31 : vector<8x128xf32>
    %33 = arith.index_cast %16 : i32 to index
    %c1 = arith.constant 1 : index
    %c0_16 = arith.constant 0 : index
    %34 = vector.load %arg5[%33, %c1, %c0_16] : memref<2x16x128xf32, #tpu.memory_space<vmem>>, vector<1x8x128xf32>
    %35 = vector.shape_cast %34 : vector<1x8x128xf32> to vector<8x128xf32>
    %c1_17 = arith.constant 1 : index
    %c0_18 = arith.constant 0 : index
    %c0_19 = arith.constant 0 : index
    %36 = vector.load %arg3[%c1_17, %c0_18, %c0_19] : memref<5x128x128xf32, #tpu.memory_space<vmem>>, vector<1x128x128xf32>
    %37 = vector.shape_cast %36 : vector<1x128x128xf32> to vector<128x128xf32>
    %cst_20 = arith.constant dense<0.000000e+00> : vector<8x128xf32>
    %38 = tpu.matmul %35, %37, %cst_20 {dimension_numbers = #tpu.dot_dimension_numbers<[1], [0], [0], [1], [0, 0, 1, 1], [], []>} : vector<8x128xf32>, vector<128x128xf32>, vector<8x128xf32> -> vector<8x128xf32>
    %39 = arith.addf %32, %38 : vector<8x128xf32>
    %40 = arith.index_cast %16 : i32 to index
    %c2 = arith.constant 2 : index
    %c0_21 = arith.constant 0 : index
    %41 = vector.load %arg5[%40, %c2, %c0_21] : memref<2x16x128xf32, #tpu.memory_space<vmem>>, vector<1x8x128xf32>
    %42 = vector.shape_cast %41 : vector<1x8x128xf32> to vector<8x128xf32>
    %c2_22 = arith.constant 2 : index
    %c0_23 = arith.constant 0 : index
    %c0_24 = arith.constant 0 : index
    %43 = vector.load %arg3[%c2_22, %c0_23, %c0_24] : memref<5x128x128xf32, #tpu.memory_space<vmem>>, vector<1x128x128xf32>
    %44 = vector.shape_cast %43 : vector<1x128x128xf32> to vector<128x128xf32>
    %cst_25 = arith.constant dense<0.000000e+00> : vector<8x128xf32>
    %45 = tpu.matmul %42, %44, %cst_25 {dimension_numbers = #tpu.dot_dimension_numbers<[1], [0], [0], [1], [0, 0, 1, 1], [], []>} : vector<8x128xf32>, vector<128x128xf32>, vector<8x128xf32> -> vector<8x128xf32>
    %46 = arith.addf %39, %45 : vector<8x128xf32>
    %47 = arith.index_cast %16 : i32 to index
    %c3 = arith.constant 3 : index
    %c0_26 = arith.constant 0 : index
    %48 = vector.load %arg5[%47, %c3, %c0_26] : memref<2x16x128xf32, #tpu.memory_space<vmem>>, vector<1x8x128xf32>
    %49 = vector.shape_cast %48 : vector<1x8x128xf32> to vector<8x128xf32>
    %c3_27 = arith.constant 3 : index
    %c0_28 = arith.constant 0 : index
    %c0_29 = arith.constant 0 : index
    %50 = vector.load %arg3[%c3_27, %c0_28, %c0_29] : memref<5x128x128xf32, #tpu.memory_space<vmem>>, vector<1x128x128xf32>
    %51 = vector.shape_cast %50 : vector<1x128x128xf32> to vector<128x128xf32>
    %cst_30 = arith.constant dense<0.000000e+00> : vector<8x128xf32>
    %52 = tpu.matmul %49, %51, %cst_30 {dimension_numbers = #tpu.dot_dimension_numbers<[1], [0], [0], [1], [0, 0, 1, 1], [], []>} : vector<8x128xf32>, vector<128x128xf32>, vector<8x128xf32> -> vector<8x128xf32>
    %53 = arith.addf %46, %52 : vector<8x128xf32>
    %54 = arith.index_cast %16 : i32 to index
    %c4 = arith.constant 4 : index
    %c0_31 = arith.constant 0 : index
    %55 = vector.load %arg5[%54, %c4, %c0_31] : memref<2x16x128xf32, #tpu.memory_space<vmem>>, vector<1x8x128xf32>
    %56 = vector.shape_cast %55 : vector<1x8x128xf32> to vector<8x128xf32>
    %c4_32 = arith.constant 4 : index
    %c0_33 = arith.constant 0 : index
    %c0_34 = arith.constant 0 : index
    %57 = vector.load %arg3[%c4_32, %c0_33, %c0_34] : memref<5x128x128xf32, #tpu.memory_space<vmem>>, vector<1x128x128xf32>
    %58 = vector.shape_cast %57 : vector<1x128x128xf32> to vector<128x128xf32>
    %cst_35 = arith.constant dense<0.000000e+00> : vector<8x128xf32>
    %59 = tpu.matmul %56, %58, %cst_35 {dimension_numbers = #tpu.dot_dimension_numbers<[1], [0], [0], [1], [0, 0, 1, 1], [], []>} : vector<8x128xf32>, vector<128x128xf32>, vector<8x128xf32> -> vector<8x128xf32>
    %60 = arith.addf %53, %59 : vector<8x128xf32>
    %c0_36 = arith.constant 0 : index
    %c0_37 = arith.constant 0 : index
    %c0_38 = arith.constant 0 : index
    %61 = vector.load %arg4[%c0_36, %c0_37, %c0_38] : memref<1x8x128xf32, #tpu.memory_space<vmem>>, vector<1x8x128xf32>
    %62 = vector.shape_cast %61 : vector<1x8x128xf32> to vector<8x128xf32>
    %63 = vector.shape_cast %60 : vector<8x128xf32> to vector<1x8x128xf32>
    tpu.vector_store %arg4[%c0_36, %c0_37, %c0_38], %63 {strides = array<i32>} : memref<1x8x128xf32, #tpu.memory_space<vmem>>, vector<1x8x128xf32>,
    return
  }
  func.func @transform_1(%arg0: i32, %arg1: i32) -> (i32, i32, i32) {
    %c0_i32 = arith.constant 0 : i32
    %c0_i32_0 = arith.constant 0 : i32
    %c0_i32_1 = arith.constant 0 : i32
    %c0_i32_2 = arith.constant 0 : i32
    return %c0_i32, %c0_i32_0, %c0_i32_1 : i32, i32, i32
  }
  func.func @transform_2(%arg0: i32, %arg1: i32) -> (i32, i32, i32) {
    %c0_i32 = arith.constant 0 : i32
    %c0_i32_0 = arith.constant 0 : i32
    return %arg0, %arg1, %c0_i32 : i32, i32, i32
  }
}

</mosaic_0001>

<bundles_post_ra>
// kernel: convolution_2d.1
= control target key start
LH: loop header
LB: loop body
LE: loop exit
PB: predicated region body
PF: predicated region fallthrough
CT: control target
= control target key end

     0   :  { %s1391_s9 = smov 0   ;;  %s1393_s10 = smov 0   ;;  %s1766_s0 = inlined_call_operand.vmem [shape: f32[2,24,128], index: 0, kind: input, shape index: {}]   ;;  %s1767_s1 = inlined_call_operand.vmem [shape: f32[5,128,128], index: 1, kind: input, shape index: {}]   ;;  %s1768_s2 = inlined_call_operand.vmem [shape: f32[2,16,128], index: 2, kind: output, shape index: {}]  }
   0x1   :  { %s1395_s11 = smov 0   ;;  %s1397_s12 = smov 0  }
   0x2   :  { %s1399_s13 = smov 0  }
   0x3 LB: > { %s21_s14 = sadd.s32 1, %s1363_s11  ;;  %s24_s15 = sadd.s32 1, %s1367_s12  ;;  %s1371_s13 = sphi %s1399_s13, %s12_s13   ;;  %s1367_s12 = sphi %s1397_s12, %s1772_s12   ;;  %s1363_s11 = sphi %s1395_s11, %s1771_s11   ;;  %s1359_s10 = sphi %s1393_s10, %s1770_s10   ;;  %s1355_s9 = sphi %s1391_s9, %s1769_s9  }
   0x4   : > { %p22_p0 = scmp.ge.s32.totalorder %s21_s14, 2  ;;  %p815_p1 = scmp.ge.s32.totalorder %s1371_s13, 1 }
   0x5   : > { %p92_p2 = scmp.lt.s32.totalorder %s1371_s13, 5 }
   0x6   : > { %s1774_s14 = smov (%p22_p0, %s21_s14), 0  ;;  %s1776_s15 = smov (!%p22_p0, %s24_s15), %s1367_s12 }
   0x7   : > { %p93_p3 = pnand %p815_p1, %p92_p2  ;;  %p26_p4 = scmp.ge.s32.totalorder %s1776_s15, 2 }
   0x8   : > { %p110_p5 = scmp.lt.s32.totalorder (!%p93_p3), %s1359_s10, 1  ;;  %p112_p6 = scmp.lt.s32.totalorder (!%p93_p3), %s1355_s9, 1 }
   0x9   : > { %s1778_s15 = smov (%p26_p4, %s1776_s15), 0  ;;  %96 = sbr.rel (%p93_p3) target bundleno = 369 (0x171), region = 24 }
   0xa   : > { %p818_p7 = scmp.ne.s32.totalorder (!%p93_p3), %s1355_s9, 0 }
  0x10   : > { %s111_s16 = scalar_select %p110_p5, %s1359_s10, 1 }
  0x11   : > { %s113_s17 = scalar_select %p112_p6, %s1355_s9, 1 }
  0x12   : > { %s816_s18 = sshll.u32 %s111_s16, 1  ;;  %121 = sbr.rel (%p818_p7) target bundleno = 27 (0x1b), region = 28 }
  0x13   : > { %s115_s19 = sadd.s32 %s816_s18, %s113_s17  ;;  %s819_s24 = sshll.u32 (!%p818_p7), %s1355_s9, 3 }
  0x14   : > { %s817_s20 = sshll.u32 %s115_s19, 3  ;;  %s123_s25 = smul.u32 (!%p818_p7), 24, %s1359_s10 }
  0x15   : > { %s1432_s23 = scalar_lea.vmem %s1768_s2, %s817_s20 }
  0x16   : > { %s124_s26 = sadd.s32 (!%p818_p7), %s819_s24, %s123_s25 }
  0x17   : > { %s125_s29 = scalar_lea.vmem (!%p818_p7), %s1766_s0, %s124_s26 }
  0x18   : > { %v158_v0 = vld [vmem:[%s125_s29] sm:$0xff] (!%p818_p7)  ;;  %v160_v1 = vld [vmem:[%s125_s29 + $0x8] sm:$0xff] (!%p818_p7) }
  0x19   : > { %159 = vst [vmem:[#allocation2] sm:$0xff] %v158_v0  ;;  %161 = vst [vmem:[#allocation2 + $0x8] sm:$0xff] %v160_v1 }
  0x1a   : > { %169 = vsyncadd [#allocation3], 256 }
  0x1b PF: > { %s170_s30 = sadd.s32 1, %s1355_s9 }
  0x1c   : > { %p820_p8 = scmp.ge.s32.totalorder %s170_s30, 2 }
  0x1d   : > { %p176_p9 = scmp.lt.s32.totalorder (!%p820_p8), %s170_s30, 0  ;;  %s177_s3 = ssub.s32 (!%p820_p8), 0, %s170_s30 }
  0x1e   : > { %174 = sbr.rel (%p820_p8) target bundleno = 45 (0x2d), region = 66  ;;  %s821_s4 = smin.u32 (!%p820_p8), %s177_s3, %s170_s30 }
  0x1f   : > { %s824_s5 = sshll.u32 (!%p820_p8), %s1355_s9, 3  ;;  %s179_s6 = sand.u32 (!%p820_p8), 1, %s821_s4  }
  0x20   : > { %s753_s7 = smul.u32 (!%p820_p8), 24, %s1359_s10  ;;  %s180_s8 = ssub.s32 (!%p820_p8), 0, %s179_s6 }
  0x22   : > { %s754_s16 = sadd.s32 (!%p820_p8), %s824_s5, %s753_s7 }
  0x23   : > { %s755_s20 = scalar_lea.vmem (!%p820_p8), %s1766_s0, %s754_s16 }
  0x24   : > { %v826_v2 = vld [vmem:[%s755_s20 + $0x8] sm:$0xff] (!%p820_p8)  ;;  %v827_v3 = vld [vmem:[%s755_s20 + $0x10] sm:$0xff] (!%p820_p8) }
  0x25   : > { %s1780_s8 = smov (!%p176_p9, %s180_s8), %s179_s6 }
  0x26   : > { %p823_p10 = scmp.lt.s32.totalorder %s1780_s8, 0  ;;  %s186_s17 = sadd.s32 2, %s1780_s8 }
  0x28   : > { %s1782_s17 = smov (!%p823_p10, %s186_s17), %s1780_s8 }
  0x29   : > { %s825_s21 = sshll.u32 %s1782_s17, 4  ;;  %s193_s24 = scalar_lea.sflag [#allocation3], %s1782_s17 }
  0x2a   : > { %s192_s22 = scalar_lea.vmem [#allocation2], %s825_s21 }
  0x2b   : > { %227 = vst [vmem:[%s192_s22] sm:$0xff] %v826_v2  ;;  %229 = vst [vmem:[%s192_s22 + $0x8] sm:$0xff] %v827_v3 }
  0x2c   : > { %237 = vsyncadd %s193_s24, 256 }
  0x2d PF: > { %p238_p11 = scmp.lt.s32.totalorder %s1355_s9, 0  ;;  %s239_s10 = ssub.s32 0, %s1355_s9 }
  0x2e   : > { %s829_s25 = smin.u32 %s1355_s9, %s239_s10 }
  0x2f   : > { %s241_s26 = sand.u32 1, %s829_s25  }
  0x30   : > { %s242_s27 = ssub.s32 0, %s241_s26 }
  0x31   : > { %s1784_s27 = smov (!%p238_p11, %s242_s27), %s241_s26 }
  0x32   : > { %p831_p12 = scmp.lt.s32.totalorder %s1784_s27, 0  ;;  %s248_s28 = sadd.s32 2, %s1784_s27 }
  0x34   : > { %s1786_s28 = smov (!%p831_p12, %s248_s28), %s1784_s27 }
  0x35   : > { %s251_s29 = scalar_lea.sflag [#allocation3], %s1786_s28 }
  0x36   : > { %1351 = dma.done.wait %s251_s29, 256 }
  0x37   : > { %1352 = vsyncadd %s251_s29, 4294967040  ;;  %v1373_v4 = vmov 0.0|0.0   ;;  %vm1374_vm0 = vmmov 0   ;;  %v1375_v5 = vmov 0.0   ;;  %v833_v6 = vld [vmem:[%s1767_s1 + $0x80] sm:$0xff]  ;;  %v834_v7 = vld [vmem:[%s1767_s1 + $0x88] sm:$0xff] }
  0x38   : > { %1161 = vmatprep.subr.bf16.mxu1 %v1373_v4  ;;  %1209 = vmatprep.subr.bf16.mxu0 %v1373_v4  ;;  %v849_v8 = vld [vmem:[%s1767_s1 + $0x100] sm:$0xff]  ;;  %v1162_v9 = vpack.c.bf16 %v834_v7, %v833_v6  ;;  %v850_v10 = vld [vmem:[%s1767_s1 + $0x108] sm:$0xff]  ;;  %v835_v11 = vld [vmem:[%s1767_s1 + $0x90] sm:$0xff]  ;;  %s832_s30 = sshll.u32 %s1786_s28, 4 }
  0x39   : > { %1018 = vmatprep.mubr.msk.f32.mxu1 %vm1374_vm0, %v1375_v5  ;;  %1088 = vmatprep.mubr.msk.f32.mxu0 %vm1374_vm0, %v1375_v5  ;;  %v836_v12 = vld [vmem:[%s1767_s1 + $0x98] sm:$0xff]  ;;  %v1210_v13 = vpack.c.bf16 %v850_v10, %v849_v8  ;;  %v851_v14 = vld [vmem:[%s1767_s1 + $0x110] sm:$0xff]  ;;  %v837_v18 = vld [vmem:[%s1767_s1 + $0xa0] sm:$0xff]  ;;  %s1581_s17 = scalar_lea.vmem [#allocation2], %s832_s30 }
  0x3a   : > { %v852_v15 = vld [vmem:[%s1767_s1 + $0x118] sm:$0xff]  ;;  %1163 = vmatpush3.bf16.msra.mxu1 %v1162_v9  ;;  %v1165_v16 = vpack.c.bf16 %v836_v12, %v835_v11  ;;  %v838_v19 = vld [vmem:[%s1767_s1 + $0xa8] sm:$0xff]  ;;  %v853_v20 = vld [vmem:[%s1767_s1 + $0x120] sm:$0xff] }
  0x3b   : > { %1211 = vmatpush3.bf16.msra.mxu0 %v1210_v13  ;;  %1164 = vmatprep.subr.bf16.mxu1 %v1373_v4  ;;  %v1213_v17 = vpack.c.bf16 %v852_v15, %v851_v14  ;;  %v854_v21 = vld [vmem:[%s1767_s1 + $0x128] sm:$0xff]  ;;  %v1168_v22 = vpack.c.bf16 %v838_v19, %v837_v18  ;;  %v839_v24 = vld [vmem:[%s1767_s1 + $0xb0] sm:$0xff]  ;;  %v840_v25 = vld [vmem:[%s1767_s1 + $0xb8] sm:$0xff] }
  0x3c   : > { %1212 = vmatprep.subr.bf16.mxu0 %v1373_v4  ;;  %v1216_v23 = vpack.c.bf16 %v854_v21, %v853_v20  ;;  %v855_v26 = vld [vmem:[%s1767_s1 + $0x130] sm:$0xff]  ;;  %v856_v27 = vld [vmem:[%s1767_s1 + $0x138] sm:$0xff]  ;;  %v1171_v28 = vpack.c.bf16 %v840_v25, %v839_v24  ;;  %v841_v30 = vld [vmem:[%s1767_s1 + $0xc0] sm:$0xff] }
  0x3d   : > { %v1219_v29 = vpack.c.bf16 %v856_v27, %v855_v26  ;;  %v842_v31 = vld [vmem:[%s1767_s1 + $0xc8] sm:$0xff]  ;;  %v857_v32 = vld [vmem:[%s1767_s1 + $0x140] sm:$0xff]  ;;  %v843_v36 = vld [vmem:[%s1767_s1 + $0xd0] sm:$0xff] }
  0x3e   : > { %1166 = vmatpush3.bf16.msra.mxu1 %v1165_v16  ;;  %v858_v33 = vld [vmem:[%s1767_s1 + $0x148] sm:$0xff]  ;;  %v1174_v34 = vpack.c.bf16 %v842_v31, %v841_v30  ;;  %v844_v37 = vld [vmem:[%s1767_s1 + $0xd8] sm:$0xff]  ;;  %v859_v38 = vld [vmem:[%s1767_s1 + $0x150] sm:$0xff] }
  0x3f   : > { %1214 = vmatpush3.bf16.msra.mxu0 %v1213_v17  ;;  %1167 = vmatprep.subr.bf16.mxu1 %v1373_v4  ;;  %v1222_v35 = vpack.c.bf16 %v858_v33, %v857_v32  ;;  %v860_v39 = vld [vmem:[%s1767_s1 + $0x158] sm:$0xff]  ;;  %v1177_v40 = vpack.c.bf16 %v844_v37, %v843_v36  ;;  %v845_v42 = vld [vmem:[%s1767_s1 + $0xe0] sm:$0xff]  ;;  %v846_v43 = vld [vmem:[%s1767_s1 + $0xe8] sm:$0xff] }
  0x40   : > { %1215 = vmatprep.subr.bf16.mxu0 %v1373_v4  ;;  %v1225_v41 = vpack.c.bf16 %v860_v39, %v859_v38  ;;  %v861_v44 = vld [vmem:[%s1767_s1 + $0x160] sm:$0xff]  ;;  %v862_v45 = vld [vmem:[%s1767_s1 + $0x168] sm:$0xff]  ;;  %v1180_v46 = vpack.c.bf16 %v846_v43, %v845_v42  ;;  %v847_v48 = vld [vmem:[%s1767_s1 + $0xf0] sm:$0xff] }
  0x41   : > { %v1228_v47 = vpack.c.bf16 %v862_v45, %v861_v44  ;;  %v848_v49 = vld [vmem:[%s1767_s1 + $0xf8] sm:$0xff]  ;;  %v863_v50 = vld [vmem:[%s1767_s1 + $0x170] sm:$0xff]  ;;  %v258_v54 = vld [vmem:[%s1767_s1] sm:$0xff] }
  0x42   : > { %1169 = vmatpush3.bf16.msra.mxu1 %v1168_v22  ;;  %v864_v51 = vld [vmem:[%s1767_s1 + $0x178] sm:$0xff]  ;;  %v1183_v52 = vpack.c.bf16 %v848_v49, %v847_v48  ;;  %v259_v55 = vld [vmem:[%s1767_s1 + $0x8] sm:$0xff]  ;;  %v865_v56 = vld [vmem:[%s1767_s1 + $0x180] sm:$0xff] }
  0x43   : > { %1217 = vmatpush3.bf16.msra.mxu0 %v1216_v23  ;;  %1170 = vmatprep.subr.bf16.mxu1 %v1373_v4  ;;  %v1231_v53 = vpack.c.bf16 %v864_v51, %v863_v50  ;;  %v866_v57 = vld [vmem:[%s1767_s1 + $0x188] sm:$0xff]  ;;  %v1186_v59 = vpack.c.bf16 %v259_v55, %v258_v54  ;;  %v260_v62 = vld [vmem:[%s1767_s1 + $0x10] sm:$0xff]  ;;  %v261_v63 = vld [vmem:[%s1767_s1 + $0x18] sm:$0xff] }
  0x44   : > { %1218 = vmatprep.subr.bf16.mxu0 %v1373_v4  ;;  %v274_v58 = vld [vmem:[%s1581_s17 + $0x1] sm:$0xff]  ;;  %v1234_v61 = vpack.c.bf16 %v866_v57, %v865_v56  ;;  %v867_v0 = vld [vmem:[%s1767_s1 + $0x190] sm:$0xff]  ;;  %v868_v1 = vld [vmem:[%s1767_s1 + $0x198] sm:$0xff]  ;;  %v1189_v2 = vpack.c.bf16 %v261_v63, %v260_v62 }
  0x45   : > { %v432_v60 = vld [vmem:[%s1581_s17 + $0x2] sm:$0xff]  ;;  %v1237_v3 = vpack.c.bf16 %v868_v1, %v867_v0  ;;  %v264_v12 = vld [vmem:[%s1767_s1 + $0x30] sm:$0xff]  ;;  %v265_v13 = vld [vmem:[%s1767_s1 + $0x38] sm:$0xff] }
  0x46   : > { %1172 = vmatpush3.bf16.msra.mxu1 %v1171_v28  ;;  %v262_v6 = vld [vmem:[%s1767_s1 + $0x20] sm:$0xff]  ;;  %v263_v7 = vld [vmem:[%s1767_s1 + $0x28] sm:$0xff]  ;;  %v871_v14 = vld [vmem:[%s1767_s1 + $0x1b0] sm:$0xff]  ;;  %v1195_v16 = vpack.c.bf16 %v265_v13, %v264_v12 }
  0x47   : > { %1220 = vmatpush3.bf16.msra.mxu0 %v1219_v29  ;;  %1173 = vmatprep.subr.bf16.mxu1 %v1373_v4  ;;  %v869_v8 = vld [vmem:[%s1767_s1 + $0x1a0] sm:$0xff]  ;;  %v870_v9 = vld [vmem:[%s1767_s1 + $0x1a8] sm:$0xff]  ;;  %v1192_v10 = vpack.c.bf16 %v263_v7, %v262_v6  ;;  %v872_v15 = vld [vmem:[%s1767_s1 + $0x1b8] sm:$0xff] }
  0x48   : > { %1221 = vmatprep.subr.bf16.mxu0 %v1373_v4  ;;  %v1240_v11 = vpack.c.bf16 %v870_v9, %v869_v8  ;;  %v1243_v17 = vpack.c.bf16 %v872_v15, %v871_v14  ;;  %v266_v18 = vld [vmem:[%s1767_s1 + $0x40] sm:$0xff]  ;;  %v267_v19 = vld [vmem:[%s1767_s1 + $0x48] sm:$0xff]  ;;  %v268_v24 = vld [vmem:[%s1767_s1 + $0x50] sm:$0xff] }
  0x49   : > { %v873_v20 = vld [vmem:[%s1767_s1 + $0x1c0] sm:$0xff]  ;;  %v874_v21 = vld [vmem:[%s1767_s1 + $0x1c8] sm:$0xff]  ;;  %v1198_v22 = vpack.c.bf16 %v267_v19, %v266_v18  ;;  %v269_v25 = vld [vmem:[%s1767_s1 + $0x58] sm:$0xff] }
  0x4a   : > { %1175 = vmatpush3.bf16.msra.mxu1 %v1174_v34  ;;  %v1246_v23 = vpack.c.bf16 %v874_v21, %v873_v20  ;;  %v875_v26 = vld [vmem:[%s1767_s1 + $0x1d0] sm:$0xff]  ;;  %v876_v27 = vld [vmem:[%s1767_s1 + $0x1d8] sm:$0xff]  ;;  %v1201_v28 = vpack.c.bf16 %v269_v25, %v268_v24  ;;  %v270_v30 = vld [vmem:[%s1767_s1 + $0x60] sm:$0xff] }
  0x4b   : > { %1223 = vmatpush3.bf16.msra.mxu0 %v1222_v35  ;;  %1176 = vmatprep.subr.bf16.mxu1 %v1373_v4  ;;  %v1249_v29 = vpack.c.bf16 %v876_v27, %v875_v26  ;;  %v271_v31 = vld [vmem:[%s1767_s1 + $0x68] sm:$0xff]  ;;  %v877_v32 = vld [vmem:[%s1767_s1 + $0x1e0] sm:$0xff]  ;;  %v272_v36 = vld [vmem:[%s1767_s1 + $0x70] sm:$0xff] }
  0x4c   : > { %1224 = vmatprep.subr.bf16.mxu0 %v1373_v4  ;;  %v878_v33 = vld [vmem:[%s1767_s1 + $0x1e8] sm:$0xff]  ;;  %v1204_v34 = vpack.c.bf16 %v271_v31, %v270_v30  ;;  %v273_v37 = vld [vmem:[%s1767_s1 + $0x78] sm:$0xff]  ;;  %v879_v38 = vld [vmem:[%s1767_s1 + $0x1f0] sm:$0xff] }
  0x4d   : > { %v1252_v35 = vpack.c.bf16 %v878_v33, %v877_v32  ;;  %v880_v39 = vld [vmem:[%s1767_s1 + $0x1f8] sm:$0xff]  ;;  %v881_v42 = vld [vmem:[%s1767_s1 + $0x200] sm:$0xff]  ;;  %v882_v43 = vld [vmem:[%s1767_s1 + $0x208] sm:$0xff] }
  0x4e   : > { %1178 = vmatpush3.bf16.msra.mxu1 %v1177_v40  ;;  %v1207_v40 = vpack.c.bf16 %v273_v37, %v272_v36  ;;  %v257_v44 = vld [vmem:[%s1581_s17] sm:$0xff]  ;;  %v884_v48 = vld [vmem:[%s1767_s1 + $0x218] sm:$0xff]  ;;  %v886_v51 = vld [vmem:[%s1767_s1 + $0x228] sm:$0xff] }
  0x4f   : > { %1226 = vmatpush3.bf16.msra.mxu0 %v1225_v41  ;;  %1179 = vmatprep.subr.bf16.mxu1 %v1373_v4  ;;  %v1255_v41 = vpack.c.bf16 %v880_v39, %v879_v38  ;;  %v521_v45 = vld [vmem:[%s1581_s17 + $0x3] sm:$0xff]  ;;  %v895_v0 = vld [vmem:[%s1767_s1 + $0x270] sm:$0xff]  ;;  %v896_v1 = vld [vmem:[%s1767_s1 + $0x278] sm:$0xff] }
  0x50   : > { %1227 = vmatprep.subr.bf16.mxu0 %v1373_v4  ;;  %v885_v50 = vld [vmem:[%s1767_s1 + $0x220] sm:$0xff]  ;;  %v890_v56 = vld [vmem:[%s1767_s1 + $0x248] sm:$0xff] }
  0x51   : > { %v889_v55 = vld [vmem:[%s1767_s1 + $0x240] sm:$0xff]  ;;  %v894_v62 = vld [vmem:[%s1767_s1 + $0x268] sm:$0xff] }
  0x52   : > { %1181 = vmatpush3.bf16.msra.mxu1 %v1180_v46  ;;  %v1258_v46 = vpack.c.bf16 %v882_v43, %v881_v42  ;;  %v1270_v57 = vpack.c.bf16 %v890_v56, %v889_v55 }
  0x53   : > { %1229 = vmatpush3.bf16.msra.mxu0 %v1228_v47  ;;  %1182 = vmatprep.subr.bf16.mxu1 %v1373_v4  ;;  %v883_v47 = vld [vmem:[%s1767_s1 + $0x210] sm:$0xff] }
  0x54   : > { %1230 = vmatprep.subr.bf16.mxu0 %v1373_v4  ;;  %v1261_v49 = vpack.c.bf16 %v884_v48, %v883_v47 }
  0x56   : > { %1184 = vmatpush3.bf16.msra.mxu1 %v1183_v52  ;;  %v1264_v52 = vpack.c.bf16 %v886_v51, %v885_v50 }
  0x57   : > { %1232 = vmatpush3.bf16.msra.mxu0 %v1231_v53  ;;  %1185 = vmatprep.subr.bf16.mxu1 %v1373_v4  ;;  %v887_v53 = vld [vmem:[%s1767_s1 + $0x230] sm:$0xff] }
  0x58   : > { %1233 = vmatprep.subr.bf16.mxu0 %v1373_v4 }
  0x59   : > { %1019 = vmatmul.mubr.f32.vlgmr.msra.gmra.mrb[0].mxu1 %v274_v58  ;;  %v891_v58 = vld [vmem:[%s1767_s1 + $0x250] sm:$0xff] }
  0x5a   : > { %1187 = vmatpush3.bf16.msra.mxu1 %v1186_v59  ;;  %1089 = vmatmul.mubr.f32.vlgmr.msra.gmra.mrb[0].mxu0 %v432_v60  ;;  %v892_v59 = vld [vmem:[%s1767_s1 + $0x258] sm:$0xff] }
  0x5b   : > { %1235 = vmatpush3.bf16.msra.mxu0 %v1234_v61  ;;  %1188 = vmatprep.subr.bf16.mxu1 %v1373_v4  ;;  %v1273_v60 = vpack.c.bf16 %v892_v59, %v891_v58  ;;  %v893_v61 = vld [vmem:[%s1767_s1 + $0x260] sm:$0xff] }
  0x5c   : > { %1236 = vmatprep.subr.bf16.mxu0 %v1373_v4  ;;  %1053 = vmatprep.mubr.msk.f32.mxu1 %vm1374_vm0, %v1375_v5  ;;  %v1276_v63 = vpack.c.bf16 %v894_v62, %v893_v61 }
  0x5d   : > { %1123 = vmatprep.mubr.msk.f32.mxu0 %vm1374_vm0, %v1375_v5 }
  0x5e   : > { %1190 = vmatpush3.bf16.msra.mxu1 %v1189_v2  ;;  %v1279_v2 = vpack.c.bf16 %v896_v1, %v895_v0 }
  0x5f   : > { %1238 = vmatpush3.bf16.msra.mxu0 %v1237_v3  ;;  %1191 = vmatprep.subr.bf16.mxu1 %v1373_v4  ;;  %v610_v3 = vld [vmem:[%s1581_s17 + $0x4] sm:$0xff] }
  0x60   : > { %1239 = vmatprep.subr.bf16.mxu0 %v1373_v4 }
  0x62   : > { %1193 = vmatpush3.bf16.msra.mxu1 %v1192_v10 }
  0x63   : > { %1241 = vmatpush3.bf16.msra.mxu0 %v1240_v11  ;;  %1194 = vmatprep.subr.bf16.mxu1 %v1373_v4 }
  0x64   : > { %1242 = vmatprep.subr.bf16.mxu0 %v1373_v4 }
  0x66   : > { %1196 = vmatpush3.bf16.msra.mxu1 %v1195_v16 }
  0x67   : > { %1244 = vmatpush3.bf16.msra.mxu0 %v1243_v17  ;;  %1197 = vmatprep.subr.bf16.mxu1 %v1373_v4 }
  0x68   : > { %1245 = vmatprep.subr.bf16.mxu0 %v1373_v4 }
  0x6a   : > { %1199 = vmatpush3.bf16.msra.mxu1 %v1198_v22 }
  0x6b   : > { %1247 = vmatpush3.bf16.msra.mxu0 %v1246_v23  ;;  %1200 = vmatprep.subr.bf16.mxu1 %v1373_v4 }
  0x6c   : > { %1248 = vmatprep.subr.bf16.mxu0 %v1373_v4 }
  0x6e   : > { %1202 = vmatpush3.bf16.msra.mxu1 %v1201_v28 }
  0x6f   : > { %1250 = vmatpush3.bf16.msra.mxu0 %v1249_v29  ;;  %1203 = vmatprep.subr.bf16.mxu1 %v1373_v4 }
  0x70   : > { %1251 = vmatprep.subr.bf16.mxu0 %v1373_v4 }
  0x72   : > { %1205 = vmatpush3.bf16.msra.mxu1 %v1204_v34 }
  0x73   : > { %1253 = vmatpush3.bf16.msra.mxu0 %v1252_v35  ;;  %1206 = vmatprep.subr.bf16.mxu1 %v1373_v4 }
  0x74   : > { %1254 = vmatprep.subr.bf16.mxu0 %v1373_v4 }
  0x76   : > { %1208 = vmatpush3.bf16.msra.mxu1 %v1207_v40 }
  0x77   : > { %1256 = vmatpush3.bf16.msra.mxu0 %v1255_v41 }
  0x78   : > { %1257 = vmatprep.subr.bf16.mxu0 %v1373_v4 }
  0x79   : > { %1054 = vmatmul.mubr.f32.vlgmr.msra.gmra.mrb[0].mxu1 %v257_v44 }
  0x7a   : > { %1124 = vmatmul.mubr.f32.vlgmr.msra.gmra.mrb[0].mxu0 %v521_v45 }
  0x7b   : > { %1259 = vmatpush3.bf16.msra.mxu0 %v1258_v46  ;;  %1158 = vmatprep.mubr.msk.f32.mxu0 %vm1374_vm0, %v1375_v5  ;;  %v888_v5 = vld [vmem:[%s1767_s1 + $0x238] sm:$0xff] }
  0x7c   : > { %1260 = vmatprep.subr.bf16.mxu0 %v1373_v4  ;;  %v1267_v54 = vpack.c.bf16 %v888_v5, %v887_v53 }
  0x7f   : > { %1262 = vmatpush3.bf16.msra.mxu0 %v1261_v49 }
  0x80   : > { %1263 = vmatprep.subr.bf16.mxu0 %v1373_v4 }
  0x83   : > { %1265 = vmatpush3.bf16.msra.mxu0 %v1264_v52 }
  0x84   : > { %1266 = vmatprep.subr.bf16.mxu0 %v1373_v4 }
  0x87   : > { %1268 = vmatpush3.bf16.msra.mxu0 %v1267_v54 }
  0x88   : > { %1269 = vmatprep.subr.bf16.mxu0 %v1373_v4 }
  0x8b   : > { %1271 = vmatpush3.bf16.msra.mxu0 %v1270_v57 }
  0x8c   : > { %1272 = vmatprep.subr.bf16.mxu0 %v1373_v4 }
  0x8f   : > { %1274 = vmatpush3.bf16.msra.mxu0 %v1273_v60 }
  0x90   : > { %1275 = vmatprep.subr.bf16.mxu0 %v1373_v4 }
  0x93   : > { %1277 = vmatpush3.bf16.msra.mxu0 %v1276_v63 }
  0x94   : > { %1278 = vmatprep.subr.bf16.mxu0 %v1373_v4 }
  0x97   : > { %1280 = vmatpush3.bf16.msra.mxu0 %v1279_v2 }
  0x9a   : > { %1159 = vmatmul.mubr.f32.vlgmr.msra.gmra.mrb[0].mxu0 %v610_v3 }
 0x14c   : > { %v428_v6 = vpop.f32.mrb[0].mxu1 }
 0x14d   : > { %v1055_v7 = vpop.f32.mrb[1].mxu1 }
 0x16d   : > { %v694_v8 = vpop.f32.mrb[0].mxu0 }
 0x16e   : > { %v1281_v9 = vadd.f32 %v694_v8, %v428_v6  ;;  %v1160_v10 = vpop.f32.mrb[1].mxu0 }
 0x170   : > { %699 = vst [vmem:[%s1432_s23] sm:$0xff] %v1281_v9 }
 0x171 PF: > { %s12_s13 = sadd.s32 1, %s1371_s13   ;;  %s1769_s9 = smov %s1363_s11 }
 0x172   : > { %p9_p13 = scmp.ge.s32.totalorder %s12_s13, 6   ;;  %s1770_s10 = smov %s1367_s12 }
 0x173   : > { %s1771_s11 = smov %s1774_s14  ;;  %s1772_s12 = smov %s1778_s15 }
 0x174   :  { %11 = sbr.rel (!%p9_p13) target bundleno = 3 (0x3), region = 154 }
 0x17b   :  { %727 = vsyncmov [#allocation3] }
 0x17e   :  { %s728_s23 = vpop.sfrf %727 }
 0x17f   :  { %p899_p0 = scmp.ne.s32.totalorder %s728_s23, 0 }
 0x181   :  { %732 = shalt.err (%p899_p0)  }
 0x182   :  { %734 = vsyncmov [#allocation3 + $0x1] }
 0x185   :  { %s735_s17 = vpop.sfrf %734 }
 0x186   :  { %p900_p1 = scmp.ne.s32.totalorder %s735_s17, 0 }
 0x188   :  { %739 = shalt.err (%p900_p1)  }

</bundles_post_ra>
